<compile_context>
chip_gen: v6e
topology: v6e:2x2x1
jax: 0.10.0
libtpu: 0.0.40
codegen_flags: <defaults>
</compile_context>

<pallas_src>
import numpy as np
import jax
import jax.numpy as jnp
from jax.experimental import pallas as pl
from jax.experimental.pallas import tpu as pltpu


def _spatial_attention_kernel(m_ref, b_ref, x_ref, o_ref):
    """One block of batch rows on a flattened, lane-dense C*L axis.

    m_ref: (1, N)  f32 VMEM  -- fused pool+conv weights, m[j] = w[j // L] / L
    b_ref: (1,)    f32 SMEM  -- conv bias
    x_ref: (TB, N) VMEM      -- TB batch rows, N = C*L
    o_ref: (TB, N) VMEM
    """
    # gate[b] = sum_c w[c] * mean_l x[b, c, l] + bias == sum_j x[b, j] * m[j] + bias
    xw = x_ref[...].astype(jnp.float32) * m_ref[...]           # (TB, N) f32
    gate = jnp.sum(xw, axis=-1, keepdims=True) + b_ref[0]      # (TB, 1) f32
    # Re-read x from VMEM for the scale (keeps vreg pressure low); the store
    # covers the full C*L lane axis (unmasked vst for realistic sizes).
    o_ref[...] = (x_ref[...].astype(jnp.float32) * gate).astype(o_ref.dtype)


_BLOCK_BUDGET_BYTES = 6 * 1024 * 1024  # per-block cap; ~4x (dbl-buffered in+out) < 32 MiB


def _pick_row_tile(batch, row_bytes):
    """Choose the batch-row tile size for the (TB, C*L) blocks."""
    # TODO(synk): if a single batch row (C*L*itemsize) exceeds the VMEM budget,
    # switch to a two-pass gate/apply structure that also tiles the lane axis.
    max_rows = max(1, _BLOCK_BUDGET_BYTES // max(1, row_bytes))
    if batch <= max_rows:
        if batch >= 16:
            # Medium problems: give >= 2 parallel grid steps (v7x dual TensorCores),
            # keeping the tile sublane-aligned (multiple of 8).
            half = (((batch + 1) // 2) // 8) * 8
            if half >= 8:
                return half
        return batch  # tiny problems: one grid step, zero extra per-step overhead
    tb = (max_rows // 8) * 8
    return max(tb, 8)


def spatial_attention(x, weight, bias):
    """Pallas TPU forward pass of SpatialAttention.

    x:      [B, C, L]  float32 or bfloat16
    weight: [1, C, 1]  Conv1d(C, 1, kernel_size=1) weight
    bias:   [1]        Conv1d bias
    """
    B, C, L = x.shape
    N = C * L
    itemsize = jnp.dtype(x.dtype).itemsize

    # Fuse AdaptiveAvgPool1d(1) + 1x1 conv into a single length-N weight vector so
    # the kernel stays on a flattened [B, C*L] view (no in-kernel reshape needed).
    m = jnp.repeat(weight.reshape(C).astype(jnp.float32), L) / jnp.float32(L)
    m = m.reshape(1, N)
    b1 = bias.reshape(1).astype(jnp.float32)

    x2 = x.reshape(B, N)

    tb = _pick_row_tile(B, N * itemsize)
    grid = (pl.cdiv(B, tb),)

    block_bytes = tb * N * itemsize
    vmem_limit = int(min(100 * 1024 * 1024,
                         max(32 * 1024 * 1024, 6 * block_bytes)))

    out2 = pl.pallas_call(
        _spatial_attention_kernel,
        out_shape=jax.ShapeDtypeStruct((B, N), x.dtype),
        grid=grid,
        in_specs=[
            pl.BlockSpec((1, N), lambda i: (0, 0)),              # fused pool+conv weights
            pl.BlockSpec(memory_space=pltpu.MemorySpace.SMEM),   # bias scalar
            pl.BlockSpec((tb, N), lambda i: (i, 0)),             # x row block
        ],
        out_specs=pl.BlockSpec((tb, N), lambda i: (i, 0)),
        compiler_params=pltpu.CompilerParams(
            dimension_semantics=("parallel",),
            vmem_limit_bytes=vmem_limit,
        ),
        cost_estimate=pl.CostEstimate(
            flops=3 * B * N,
            transcendentals=0,
            bytes_accessed=2 * B * N * itemsize + N * 4 + 4,
        ),
    )(m, b1, x2)

    return out2.reshape(B, C, L)


def _reference(x, weight, bias):
    pooled = jnp.mean(x, axis=-1, keepdims=True)                          # [B, C, 1]
    gate = jnp.sum(pooled * weight.reshape(1, -1, 1), axis=1, keepdims=True)
    gate = gate + bias.reshape(1, 1, 1)                                   # [B, 1, 1]
    return gate * x


if __name__ == "__main__":
    key = jax.random.PRNGKey(0)
    B, C, L = 2, 4, 16

    kx, kw, kb = jax.random.split(key, 3)
    x = jax.random.normal(kx, (B, C, L), dtype=jnp.float32)

    # Deterministic synthetic conv11 parameters (shapes from nn.Conv1d(C, 1, 1)).
    weight = jax.random.normal(kw, (1, C, 1), dtype=jnp.float32) * 0.1
    bias = jax.random.normal(kb, (1,), dtype=jnp.float32) * 0.1

    # float32 path
    out = jax.block_until_ready(spatial_attention(x, weight, bias))
    ref = _reference(x, weight, bias)
    np.testing.assert_allclose(np.asarray(out), np.asarray(ref), rtol=1e-5, atol=1e-5)

    # bfloat16 path: data moves in bf16 (half the HBM bytes), math stays in f32.
    x_bf = x.astype(jnp.bfloat16)
    out_bf = jax.block_until_ready(spatial_attention(x_bf, weight, bias))
    ref_bf = _reference(x_bf.astype(jnp.float32), weight, bias)
    np.testing.assert_allclose(np.asarray(out_bf).astype(np.float32),
                               np.asarray(ref_bf), rtol=5e-2, atol=5e-2)

    print("KERNEL_OK")
</pallas_src>

<mosaic_0001>
module attributes {stable_mosaic.version = 11 : i64} {
  func.func @_spatial_attention_kernel(%arg0: i32, %arg1: memref<1x64xf32, #tpu.memory_space<vmem>>, %arg2: memref<1xf32, #tpu.memory_space<smem>>, %arg3: memref<2x64xf32, #tpu.memory_space<vmem>>, %arg4: memref<2x64xf32, #tpu.memory_space<vmem>>) attributes {dimension_semantics = [#tpu.dimension_semantics<parallel>], iteration_bounds = array<i64: 1>, scalar_prefetch = 0 : i64, scratch_operands = 0 : i64, tpu.core_type = #tpu.core_type<tc>, window_params = [{pipeline_mode = #tpu.pipeline_mode<synchronous>, transform_indices = @transform_0, window_bounds = array<i64: 1, 64>}, {transform_indices = @transform_1, window_bounds = array<i64: 1>}, {transform_indices = @transform_2, window_bounds = array<i64: 2, 64>}, {transform_indices = @transform_3, window_bounds = array<i64: 2, 64>}]} {
    %c0 = arith.constant 0 : index
    %c0_0 = arith.constant 0 : index
    %0 = vector.load %arg3[%c0, %c0_0] : memref<2x64xf32, #tpu.memory_space<vmem>>, vector<2x64xf32>
    %c0_1 = arith.constant 0 : index
    %c0_2 = arith.constant 0 : index
    %1 = vector.load %arg1[%c0_1, %c0_2] : memref<1x64xf32, #tpu.memory_space<vmem>>, vector<1x64xf32>
    %2 = vector.broadcast %1 : vector<1x64xf32> to vector<2x64xf32>
    %3 = arith.mulf %0, %2 : vector<2x64xf32>
    %cst = arith.constant dense<0.000000e+00> : vector<2xf32>
    %4 = vector.multi_reduction <add>, %3, %cst [1] : vector<2x64xf32> to vector<2xf32>
    %5 = vector.shape_cast %4 : vector<2xf32> to vector<2x1xf32>
    %c0_3 = arith.constant 0 : index
    %6 = memref.load %arg2[%c0_3] : memref<1xf32, #tpu.memory_space<smem>>
    %7 = vector.broadcast %6 : f32 to vector<2x1xf32>
    %8 = arith.addf %5, %7 : vector<2x1xf32>
    %c0_4 = arith.constant 0 : index
    %c0_5 = arith.constant 0 : index
    %9 = vector.load %arg3[%c0_4, %c0_5] : memref<2x64xf32, #tpu.memory_space<vmem>>, vector<2x64xf32>
    %10 = vector.broadcast %8 : vector<2x1xf32> to vector<2x64xf32>
    %11 = arith.mulf %9, %10 : vector<2x64xf32>
    %c0_6 = arith.constant 0 : index
    %c0_7 = arith.constant 0 : index
    %12 = vector.load %arg4[%c0_6, %c0_7] : memref<2x64xf32, #tpu.memory_space<vmem>>, vector<2x64xf32>
    tpu.vector_store %arg4[%c0_6, %c0_7], %11 {strides = array<i32>} : memref<2x64xf32, #tpu.memory_space<vmem>>, vector<2x64xf32>,
    return
  }
  func.func @transform_0(%arg0: i32) -> (i32, i32) {
    %c0_i32 = arith.constant 0 : i32
    %c0_i32_0 = arith.constant 0 : i32
    %c0_i32_1 = arith.constant 0 : i32
    return %c0_i32, %c0_i32_0 : i32, i32
  }
  func.func @transform_1(%arg0: i32) -> i32 {
    %c0_i32 = arith.constant 0 : i32
    %c0_i32_0 = arith.constant 0 : i32
    return %c0_i32 : i32
  }
  func.func @transform_2(%arg0: i32) -> (i32, i32) {
    %c0_i32 = arith.constant 0 : i32
    %c0_i32_0 = arith.constant 0 : i32
    return %arg0, %c0_i32 : i32, i32
  }
  func.func @transform_3(%arg0: i32) -> (i32, i32) {
    %c0_i32 = arith.constant 0 : i32
    %c0_i32_0 = arith.constant 0 : i32
    return %arg0, %c0_i32 : i32, i32
  }
}

</mosaic_0001>

<bundles_post_ra>
// kernel: tpu_custom_call.1
= control target key start
LH: loop header
LB: loop body
LE: loop exit
PB: predicated region body
PF: predicated region fallthrough
CT: control target
= control target key end

     0   :  { %vm25_vm0 = vcmask 517120   ;;  %s105_s0 = inlined_call_operand.vmem [shape: f32[1,64], index: 0, kind: input, shape index: {}]   ;;  %s106_s1 = inlined_call_operand.<no memory space> [shape: f32[1], index: 1, kind: input, shape index: {}]   ;;  %s107_s2 = inlined_call_operand.vmem [shape: f32[2,64], index: 2, kind: input, shape index: {}]   ;;  %s108_s3 = inlined_call_operand.hbm [shape: f32[2,64], index: 3, kind: output, shape index: {}]  }
   0x1   :  { %v16_v0 = vld [vmem:[%s107_s2] sm:$0x3] }
   0x2   :  { %v48_v1 = vld [vmem:[%s105_s0] ss:$0 sm:$0xff] }
   0x3   :  { %v24_v2 = vmul.f32 %v48_v1, %v16_v0 }
   0x4   :  { %9 = vsyncpa [#allocation4], 0  ;;  %v30_v4 = vstv %s106_s1  ;;  %s72_s18 = smov [#allocation3]  }
   0x5   :  { %v26_v3 = vsel %vm25_vm0, %v24_v2, 0.0  ;;  %s40_s19 = sshll.u32 %s72_s18, 4  ;;  %s41_s19 = int_to_ptr.vmem [resolvable:$true] %s40_s19 }
   0x6   :  { %27 = vadd.xlane.f32.xlu0 %v26_v3  ;;  %s50_s2 = scalar_lea.vmem %s41_s19, 32  ;;  %p55_p1 = scmp.lt.s32.totalorder %s41_s19, %s41_s19 }
   0x7   :  { %p51_p0 = scmp.ne.s32.totalorder %s41_s19, %s50_s2  ;;  %p56_p2 = scmp.lt.s32.totalorder %s50_s2, %s50_s2 }
   0x9   :  { %p57_p3 = por %p56_p2, %p55_p1 }
   0xb   :  { %p58_p4 = pnand %p57_p3, %p51_p0 }
  0x8f   :  { %v28_v5 = vpop.xlane.xlu0 %27 }
  0x90   :  { %v31_v6 = vadd.f32 %v30_v4, %v28_v5 }
  0x92   :  { %v32_v7 = vmul.f32 %v31_v6, %v16_v0 }
  0x94   :  { %33 = vst.msk [vmem:[#allocation3] sm:$0x3] %vm25_vm0, %v32_v7 }
  0x95   :  { %61 = shalt.err (!%p58_p4)
}
  0x96   :  { %43 = dma.vmem_to_hbm [thread:$0]  %s41_s19, 32, %s108_s3, [#allocation4]  }
  0x97   :  { %70 = dma.done.wait [#allocation4], 32  }
  0x98   :  { %71 = vsyncadd [#allocation4], 4294967264 }
  0x99   :  { %47 = vsyncpa [#allocation4], 1 }

</bundles_post_ra>
